<compile_context>
chip_gen: v7x
topology: tpu7x:2x2x1
jax: 0.10.0
libtpu: 0.0.40
codegen_flags: <defaults>
</compile_context>

<pallas_src>
import functools

import jax
import jax.numpy as jnp
from jax.experimental import pallas as pl
from jax.experimental.pallas import tpu as pltpu

_LANES = 128
_TILE_ROWS = 1024                      # (1024, 128) f32 block = 512 KiB per buffer
_TILE_ELEMS = _TILE_ROWS * _LANES      # 131072 elements per grid step
_PALLAS_MIN_ELEMS = _TILE_ELEMS        # below this the kernel is pure launch overhead


def _constant_fill_kernel(value_ref, out_ref):
    # value_ref: (1,) f32 scalar in SMEM; out_ref: (TILE_ROWS, 128) f32 block in VMEM.
    # Pure VPU broadcast + full-width (unmasked) vector stores; one block per grid
    # step so the HBM writeback pipelines against the fill of the next block.
    out_ref[...] = jnp.full(out_ref.shape, value_ref[0], dtype=out_ref.dtype)


@functools.lru_cache(maxsize=None)
def _build_constant_fill(num_tiles: int):
    """Cached, jitted callable: SMEM scalar -> (num_tiles * _TILE_ELEMS,) constant f32."""
    rows = num_tiles * _TILE_ROWS
    fill = pl.pallas_call(
        _constant_fill_kernel,
        out_shape=jax.ShapeDtypeStruct((rows, _LANES), jnp.float32),
        grid=(num_tiles,),
        in_specs=[pl.BlockSpec(memory_space=pltpu.MemorySpace.SMEM)],
        out_specs=pl.BlockSpec((_TILE_ROWS, _LANES), lambda i: (i, 0)),
        compiler_params=pltpu.CompilerParams(
            # Independent output blocks: shard the store stream across v7x's 2 TCs.
            dimension_semantics=("parallel",),
        ),
        cost_estimate=pl.CostEstimate(
            flops=0, transcendentals=0, bytes_accessed=rows * _LANES * 4),
    )

    @jax.jit
    def run(value_arr):
        # (rows, 128) -> (rows*128,) is a contiguous row-major reshape (bitcast,
        # no extra HBM pass). Exact-n trimming happens at the caller only when
        # n is not a tile multiple.
        return fill(value_arr).reshape(-1)

    return run


def constant_values(value, n=1):
    """n copies of `value` as a float32 vector."""
    n = int(n)
    if n < 0:
        raise ValueError("n must be non-negative")
    value = float(value)

    if n <= _PALLAS_MIN_ELEMS:
        # Launch-overhead-bound regime (includes n == 0 and n == 1): a plain XLA
        # fill beats a kernel dispatch + host sync.
        return jnp.full((n,), value, dtype=jnp.float32)

    # Bucket the tile count to a power of two -> O(log N) distinct compiles.
    num_tiles = pl.next_power_of_2(pl.cdiv(n, _TILE_ELEMS))
    value_arr = jnp.asarray([value], dtype=jnp.float32)
    out = _build_constant_fill(num_tiles)(value_arr)
    return out if out.shape[0] == n else out[:n]


class ConstantRewardModelPallas:
    """Mirrors ConstantRewardModel: constant rewards, inputs ignored."""

    def __init__(self, forward_value=1, backward_value=0, metagraph=None, **kwargs):
        self.forward_value = float(forward_value)
        self.backward_value = float(backward_value)
        self.metagraph = metagraph

    def forward(self, x):
        # x is intentionally unused (matches the PyTorch module); it is never
        # moved on-chip by this call.
        return constant_values(self.forward_value, n=1)[0]

    def reward(self, completions):
        # torch.tensor([self.forward([c]) for c in completions], dtype=float32)
        # -> one batched fill producing all len(completions) identical rewards.
        # An empty completions list yields an empty float32 vector (matches torch).
        return constant_values(self.forward_value, n=len(completions))

    def backward(self, completions, rewards, n=1):
        # TODO(synk): original uses n = self.metagraph.n.item(); metagraph has no
        #             Pallas equivalent, so n falls back to the argument here.
        if self.metagraph is not None and hasattr(self.metagraph, "n"):
            n = int(self.metagraph.n)
        return constant_values(self.backward_value, n=n)


if __name__ == "__main__":
    key = jax.random.PRNGKey(0)
    # Small synthetic "completion encoding" in NCHW layout: (B=2, C=4, H=16, W=16).
    x = jax.random.normal(key, (2, 4, 16, 16), dtype=jnp.float32)

    model = ConstantRewardModelPallas(forward_value=1, backward_value=0)

    # forward(x): constant 1.0, x ignored (small-n XLA fast path).
    r = jax.block_until_ready(model.forward(x))
    assert r.dtype == jnp.float32
    assert float(r) == 1.0

    # reward() over a batch of "completions".
    rewards = jax.block_until_ready(model.reward([x[0:1], x[1:2]]))
    assert rewards.shape == (2,) and rewards.dtype == jnp.float32
    assert bool(jnp.all(rewards == 1.0))

    # Empty completions list -> empty float32 tensor (matches the torch reference).
    empty = jax.block_until_ready(model.reward([]))
    assert empty.shape == (0,) and empty.dtype == jnp.float32

    # backward(): n copies of backward_value (0.0 here).
    grads = jax.block_until_ready(model.backward([x[0:1], x[1:2]], rewards, n=4))
    assert grads.shape == (4,) and grads.dtype == jnp.float32
    assert bool(jnp.all(grads == 0.0))

    # Large-N path: exercises the gridded, pipelined Pallas fill kernel once.
    n_big = 3 * _TILE_ELEMS + 17
    big = jax.block_until_ready(constant_values(2.5, n=n_big))
    assert big.shape == (n_big,) and big.dtype == jnp.float32
    assert float(big[0]) == 2.5 and float(big[-1]) == 2.5
    assert bool(jnp.all(big == 2.5))

    print("KERNEL_OK")
</pallas_src>

<mosaic_0001>
module attributes {stable_mosaic.version = 11 : i64} {
  func.func @_constant_fill_kernel(%arg0: i32, %arg1: memref<1xf32, #tpu.memory_space<smem>>, %arg2: memref<1024x128xf32, #tpu.memory_space<vmem>>) attributes {dimension_semantics = [#tpu.dimension_semantics<parallel>], iteration_bounds = array<i64: 4>, scalar_prefetch = 0 : i64, scratch_operands = 0 : i64, tpu.core_type = #tpu.core_type<tc>, window_params = [{transform_indices = @transform_0, window_bounds = array<i64: 1>}, {transform_indices = @transform_1, window_bounds = array<i64: 1024, 128>}]} {
    %c0 = arith.constant 0 : index
    %0 = memref.load %arg1[%c0] : memref<1xf32, #tpu.memory_space<smem>>
    %1 = vector.broadcast %0 : f32 to vector<1024x128xf32>
    %c0_0 = arith.constant 0 : index
    %c0_1 = arith.constant 0 : index
    %2 = vector.load %arg2[%c0_0, %c0_1] : memref<1024x128xf32, #tpu.memory_space<vmem>>, vector<1024x128xf32>
    tpu.vector_store %arg2[%c0_0, %c0_1], %1 {strides = array<i32>} : memref<1024x128xf32, #tpu.memory_space<vmem>>, vector<1024x128xf32>,
    return
  }
  func.func @transform_0(%arg0: i32) -> i32 {
    %c0_i32 = arith.constant 0 : i32
    %c0_i32_0 = arith.constant 0 : i32
    return %c0_i32 : i32
  }
  func.func @transform_1(%arg0: i32) -> (i32, i32) {
    %c0_i32 = arith.constant 0 : i32
    %c0_i32_0 = arith.constant 0 : i32
    return %arg0, %c0_i32 : i32, i32
  }
}

</mosaic_0001>

<bundles_post_ra>
// kernel: run.1
= control target key start
LH: loop header
LB: loop body
LE: loop exit
PB: predicated region body
PF: predicated region fallthrough
CT: control target
= control target key end

     0   :  { %s781_s0 = inlined_call_operand.<no memory space> [shape: f32[1], index: 0, kind: input, shape index: {}]   ;;  %s782_s1 = inlined_call_operand.hbm [shape: f32[4096,128], index: 1, kind: output, shape index: {}]  }
   0x1   :  { %6 = sst [smem:[#allocation2]] %s781_s0 }
   0x2   :  { %7 = vsyncpa [#allocation4], 0 }
   0x3   :  { %9 = vsyncpa [#allocation4 + $0x1], 0  ;;  %s422_s8 = smov 0   ;;  %s424_s9 = smov 0  }
   0x4   :  { %s426_s10 = smov 0   ;;  %s428_s11 = smov 0  }
   0x5 LB: > { %s290_s0 = sadd.s32 4294967295, %s404_s11   ;;  %s291_s12 = sadd.s32 4294967294, %s404_s11   ;;  %s404_s11 = sphi %s428_s11, %s788_s11   ;;  %s400_s10 = sphi %s426_s10, %s787_s10   ;;  %s396_s9 = sphi %s424_s9, %s786_s9   ;;  %s392_s8 = sphi %s422_s8, %s785_s8  }
   0x6   : > { %s445_s13 = sadd.s32 1, %s404_s11   ;;  %s43_s14 = sadd.s32 1, %s400_s10 }
   0x7   : > { %s40_s15 = ssub.s32 %s404_s11, %s445_s13  ;;  %p53_p0 = scmp.ne.s32.totalorder %s400_s10, %s396_s9 }
   0x8   : > { %p41_p1 = scmp.eq.s32.totalorder %s40_s15, 0  ;;  %p54_p2 = scmp.eq.s32.totalorder %s290_s0, 3 }
   0x9   : > { %p59_p3 = scmp.ne.s32.totalorder %s396_s9, %s392_s8  ;;  %p60_p4 = scmp.eq.s32.totalorder %s291_s12, 3 }
   0xa   : > { %s455_s16 = scalar_select %p41_p1, %s400_s10, %s43_s14  }
   0xb   : > { %p457_p5 = por %p54_p2, %p53_p0  ;;  %p461_p6 = por %p60_p4, %p59_p3 }
   0xc   : > { %p293_p7 = scmp.ge.s32.totalorder %s404_s11, 1  ;;  %p81_p8 = scmp.lt.s32.totalorder %s404_s11, 5 }
   0xe   : > { %p82_p9 = pnand %p293_p7, %p81_p8 }
   0xf   : > { %s93_s19 = sand.u32 (!%p82_p9), 1, %s396_s9   ;;  %s97_s20 = sld [smem:[#allocation2]] (!%p82_p9) }
  0x10   : > { %85 = sbr.rel (%p82_p9) target bundleno = 100 (0x64), region = 24  ;;  %s294_s21 = sshll.u32 (!%p82_p9), %s93_s19, 10 }
  0x11   : > { %s300_s22 = sshll.u32 (!%p82_p9), %s290_s0, 14  ;;  %s470_s23 = scalar_lea.vmem (!%p82_p9), [#allocation3], %s294_s21 }
  0x12   : > { %s241_s24 = sshll.u32 (!%p82_p9), %s470_s23, 4  ;;  %s476_s27 = scalar_lea.hbm (!%p82_p9), %s782_s1, %s300_s22  ;;  %s478_s24 = int_to_ptr.vmem [resolvable:$true] %s241_s24 }
  0x13   : > { %s740_s28 = scalar_lea.sflag (!%p82_p9), [#allocation4], %s93_s19  ;;  %s342_s29 = scalar_lea.vmem (!%p82_p9), %s478_s24, 16384 }
  0x14   : > { %p343_p10 = scmp.ne.s32.totalorder (!%p82_p9), %s478_s24, %s342_s29  ;;  %s406_s30 = smov (!%p82_p9), [#allocation3]  }
  0x15   : > { %v480_v0 = vstv (!%p82_p9), %s97_s20  ;;  %s346_s2 = sshll.u32 (!%p82_p9), %s406_s30, 4  ;;  %s347_s2 = int_to_ptr.vmem [resolvable:$false] %s346_s2 }
  0x16   : > { %99 = vst [vmem:[%s470_s23] sm:$0xff] (!%p82_p9), %v480_v0  ;;  %100 = vst [vmem:[%s470_s23 + $0x8] sm:$0xff] (!%p82_p9), %v480_v0  ;;  %p344_p11 = pnand (!%p82_p9), %p343_p10, %p457_p5  ;;  %s348_s3 = scalar_lea.vmem (!%p82_p9), %s347_s2, 32768 }
  0x17   : > { %101 = vst [vmem:[%s470_s23 + $0x10] sm:$0xff] %v480_v0  ;;  %102 = vst [vmem:[%s470_s23 + $0x18] sm:$0xff] %v480_v0  ;;  %p349_p13 = scmp.lt.s32.totalorder %s478_s24, %s347_s2  ;;  %p350_p0 = scmp.lt.s32.totalorder %s348_s3, %s342_s29 }
  0x18   : > { %103 = vst [vmem:[%s470_s23 + $0x20] sm:$0xff] %v480_v0  ;;  %104 = vst [vmem:[%s470_s23 + $0x28] sm:$0xff] %v480_v0  ;;  %p345_p12 = pneg %p344_p11 }
  0x19   : > { %105 = vst [vmem:[%s470_s23 + $0x30] sm:$0xff] %v480_v0  ;;  %106 = vst [vmem:[%s470_s23 + $0x38] sm:$0xff] %v480_v0  ;;  %p351_p1 = por %p350_p0, %p349_p13 }
  0x1a   : > { %107 = vst [vmem:[%s470_s23 + $0x40] sm:$0xff] %v480_v0  ;;  %108 = vst [vmem:[%s470_s23 + $0x48] sm:$0xff] %v480_v0 }
  0x1b   : > { %109 = vst [vmem:[%s470_s23 + $0x50] sm:$0xff] %v480_v0  ;;  %110 = vst [vmem:[%s470_s23 + $0x58] sm:$0xff] %v480_v0  ;;  %p352_p2 = pnand %p351_p1, %p345_p12 }
  0x1c   : > { %111 = vst [vmem:[%s470_s23 + $0x60] sm:$0xff] %v480_v0  ;;  %112 = vst [vmem:[%s470_s23 + $0x68] sm:$0xff] %v480_v0 }
  0x1d   : > { %113 = vst [vmem:[%s470_s23 + $0x70] sm:$0xff] %v480_v0  ;;  %114 = vst [vmem:[%s470_s23 + $0x78] sm:$0xff] %v480_v0 }
  0x1e   : > { %115 = vst [vmem:[%s470_s23 + $0x80] sm:$0xff] %v480_v0  ;;  %116 = vst [vmem:[%s470_s23 + $0x88] sm:$0xff] %v480_v0 }
  0x1f   : > { %117 = vst [vmem:[%s470_s23 + $0x90] sm:$0xff] %v480_v0  ;;  %118 = vst [vmem:[%s470_s23 + $0x98] sm:$0xff] %v480_v0 }
  0x20   : > { %119 = vst [vmem:[%s470_s23 + $0xa0] sm:$0xff] %v480_v0  ;;  %120 = vst [vmem:[%s470_s23 + $0xa8] sm:$0xff] %v480_v0 }
  0x21   : > { %121 = vst [vmem:[%s470_s23 + $0xb0] sm:$0xff] %v480_v0  ;;  %122 = vst [vmem:[%s470_s23 + $0xb8] sm:$0xff] %v480_v0 }
  0x22   : > { %123 = vst [vmem:[%s470_s23 + $0xc0] sm:$0xff] %v480_v0  ;;  %124 = vst [vmem:[%s470_s23 + $0xc8] sm:$0xff] %v480_v0 }
  0x23   : > { %125 = vst [vmem:[%s470_s23 + $0xd0] sm:$0xff] %v480_v0  ;;  %126 = vst [vmem:[%s470_s23 + $0xd8] sm:$0xff] %v480_v0 }
  0x24   : > { %127 = vst [vmem:[%s470_s23 + $0xe0] sm:$0xff] %v480_v0  ;;  %128 = vst [vmem:[%s470_s23 + $0xe8] sm:$0xff] %v480_v0 }
  0x25   : > { %129 = vst [vmem:[%s470_s23 + $0xf0] sm:$0xff] %v480_v0  ;;  %130 = vst [vmem:[%s470_s23 + $0xf8] sm:$0xff] %v480_v0 }
  0x26   : > { %131 = vst [vmem:[%s470_s23 + $0x100] sm:$0xff] %v480_v0  ;;  %132 = vst [vmem:[%s470_s23 + $0x108] sm:$0xff] %v480_v0 }
  0x27   : > { %133 = vst [vmem:[%s470_s23 + $0x110] sm:$0xff] %v480_v0  ;;  %134 = vst [vmem:[%s470_s23 + $0x118] sm:$0xff] %v480_v0 }
  0x28   : > { %135 = vst [vmem:[%s470_s23 + $0x120] sm:$0xff] %v480_v0  ;;  %136 = vst [vmem:[%s470_s23 + $0x128] sm:$0xff] %v480_v0 }
  0x29   : > { %137 = vst [vmem:[%s470_s23 + $0x130] sm:$0xff] %v480_v0  ;;  %138 = vst [vmem:[%s470_s23 + $0x138] sm:$0xff] %v480_v0 }
  0x2a   : > { %139 = vst [vmem:[%s470_s23 + $0x140] sm:$0xff] %v480_v0  ;;  %140 = vst [vmem:[%s470_s23 + $0x148] sm:$0xff] %v480_v0 }
  0x2b   : > { %141 = vst [vmem:[%s470_s23 + $0x150] sm:$0xff] %v480_v0  ;;  %142 = vst [vmem:[%s470_s23 + $0x158] sm:$0xff] %v480_v0 }
  0x2c   : > { %143 = vst [vmem:[%s470_s23 + $0x160] sm:$0xff] %v480_v0  ;;  %144 = vst [vmem:[%s470_s23 + $0x168] sm:$0xff] %v480_v0 }
  0x2d   : > { %145 = vst [vmem:[%s470_s23 + $0x170] sm:$0xff] %v480_v0  ;;  %146 = vst [vmem:[%s470_s23 + $0x178] sm:$0xff] %v480_v0 }
  0x2e   : > { %147 = vst [vmem:[%s470_s23 + $0x180] sm:$0xff] %v480_v0  ;;  %148 = vst [vmem:[%s470_s23 + $0x188] sm:$0xff] %v480_v0 }
  0x2f   : > { %149 = vst [vmem:[%s470_s23 + $0x190] sm:$0xff] %v480_v0  ;;  %150 = vst [vmem:[%s470_s23 + $0x198] sm:$0xff] %v480_v0 }
  0x30   : > { %151 = vst [vmem:[%s470_s23 + $0x1a0] sm:$0xff] %v480_v0  ;;  %152 = vst [vmem:[%s470_s23 + $0x1a8] sm:$0xff] %v480_v0 }
  0x31   : > { %153 = vst [vmem:[%s470_s23 + $0x1b0] sm:$0xff] %v480_v0  ;;  %154 = vst [vmem:[%s470_s23 + $0x1b8] sm:$0xff] %v480_v0 }
  0x32   : > { %155 = vst [vmem:[%s470_s23 + $0x1c0] sm:$0xff] %v480_v0  ;;  %156 = vst [vmem:[%s470_s23 + $0x1c8] sm:$0xff] %v480_v0 }
  0x33   : > { %157 = vst [vmem:[%s470_s23 + $0x1d0] sm:$0xff] %v480_v0  ;;  %158 = vst [vmem:[%s470_s23 + $0x1d8] sm:$0xff] %v480_v0 }
  0x34   : > { %159 = vst [vmem:[%s470_s23 + $0x1e0] sm:$0xff] %v480_v0  ;;  %160 = vst [vmem:[%s470_s23 + $0x1e8] sm:$0xff] %v480_v0 }
  0x35   : > { %161 = vst [vmem:[%s470_s23 + $0x1f0] sm:$0xff] %v480_v0  ;;  %162 = vst [vmem:[%s470_s23 + $0x1f8] sm:$0xff] %v480_v0 }
  0x36   : > { %163 = vst [vmem:[%s470_s23 + $0x200] sm:$0xff] %v480_v0  ;;  %164 = vst [vmem:[%s470_s23 + $0x208] sm:$0xff] %v480_v0 }
  0x37   : > { %165 = vst [vmem:[%s470_s23 + $0x210] sm:$0xff] %v480_v0  ;;  %166 = vst [vmem:[%s470_s23 + $0x218] sm:$0xff] %v480_v0 }
  0x38   : > { %167 = vst [vmem:[%s470_s23 + $0x220] sm:$0xff] %v480_v0  ;;  %168 = vst [vmem:[%s470_s23 + $0x228] sm:$0xff] %v480_v0 }
  0x39   : > { %169 = vst [vmem:[%s470_s23 + $0x230] sm:$0xff] %v480_v0  ;;  %170 = vst [vmem:[%s470_s23 + $0x238] sm:$0xff] %v480_v0 }
  0x3a   : > { %171 = vst [vmem:[%s470_s23 + $0x240] sm:$0xff] %v480_v0  ;;  %172 = vst [vmem:[%s470_s23 + $0x248] sm:$0xff] %v480_v0 }
  0x3b   : > { %173 = vst [vmem:[%s470_s23 + $0x250] sm:$0xff] %v480_v0  ;;  %174 = vst [vmem:[%s470_s23 + $0x258] sm:$0xff] %v480_v0 }
  0x3c   : > { %175 = vst [vmem:[%s470_s23 + $0x260] sm:$0xff] %v480_v0  ;;  %176 = vst [vmem:[%s470_s23 + $0x268] sm:$0xff] %v480_v0 }
  0x3d   : > { %177 = vst [vmem:[%s470_s23 + $0x270] sm:$0xff] %v480_v0  ;;  %178 = vst [vmem:[%s470_s23 + $0x278] sm:$0xff] %v480_v0 }
  0x3e   : > { %179 = vst [vmem:[%s470_s23 + $0x280] sm:$0xff] %v480_v0  ;;  %180 = vst [vmem:[%s470_s23 + $0x288] sm:$0xff] %v480_v0 }
  0x3f   : > { %181 = vst [vmem:[%s470_s23 + $0x290] sm:$0xff] %v480_v0  ;;  %182 = vst [vmem:[%s470_s23 + $0x298] sm:$0xff] %v480_v0 }
  0x40   : > { %183 = vst [vmem:[%s470_s23 + $0x2a0] sm:$0xff] %v480_v0  ;;  %184 = vst [vmem:[%s470_s23 + $0x2a8] sm:$0xff] %v480_v0 }
  0x41   : > { %185 = vst [vmem:[%s470_s23 + $0x2b0] sm:$0xff] %v480_v0  ;;  %186 = vst [vmem:[%s470_s23 + $0x2b8] sm:$0xff] %v480_v0 }
  0x42   : > { %187 = vst [vmem:[%s470_s23 + $0x2c0] sm:$0xff] %v480_v0  ;;  %188 = vst [vmem:[%s470_s23 + $0x2c8] sm:$0xff] %v480_v0 }
  0x43   : > { %189 = vst [vmem:[%s470_s23 + $0x2d0] sm:$0xff] %v480_v0  ;;  %190 = vst [vmem:[%s470_s23 + $0x2d8] sm:$0xff] %v480_v0 }
  0x44   : > { %191 = vst [vmem:[%s470_s23 + $0x2e0] sm:$0xff] %v480_v0  ;;  %192 = vst [vmem:[%s470_s23 + $0x2e8] sm:$0xff] %v480_v0 }
  0x45   : > { %193 = vst [vmem:[%s470_s23 + $0x2f0] sm:$0xff] %v480_v0  ;;  %194 = vst [vmem:[%s470_s23 + $0x2f8] sm:$0xff] %v480_v0 }
  0x46   : > { %195 = vst [vmem:[%s470_s23 + $0x300] sm:$0xff] %v480_v0  ;;  %196 = vst [vmem:[%s470_s23 + $0x308] sm:$0xff] %v480_v0 }
  0x47   : > { %197 = vst [vmem:[%s470_s23 + $0x310] sm:$0xff] %v480_v0  ;;  %198 = vst [vmem:[%s470_s23 + $0x318] sm:$0xff] %v480_v0 }
  0x48   : > { %199 = vst [vmem:[%s470_s23 + $0x320] sm:$0xff] %v480_v0  ;;  %200 = vst [vmem:[%s470_s23 + $0x328] sm:$0xff] %v480_v0 }
  0x49   : > { %201 = vst [vmem:[%s470_s23 + $0x330] sm:$0xff] %v480_v0  ;;  %202 = vst [vmem:[%s470_s23 + $0x338] sm:$0xff] %v480_v0 }
  0x4a   : > { %203 = vst [vmem:[%s470_s23 + $0x340] sm:$0xff] %v480_v0  ;;  %204 = vst [vmem:[%s470_s23 + $0x348] sm:$0xff] %v480_v0 }
  0x4b   : > { %205 = vst [vmem:[%s470_s23 + $0x350] sm:$0xff] %v480_v0  ;;  %206 = vst [vmem:[%s470_s23 + $0x358] sm:$0xff] %v480_v0 }
  0x4c   : > { %207 = vst [vmem:[%s470_s23 + $0x360] sm:$0xff] %v480_v0  ;;  %208 = vst [vmem:[%s470_s23 + $0x368] sm:$0xff] %v480_v0 }
  0x4d   : > { %209 = vst [vmem:[%s470_s23 + $0x370] sm:$0xff] %v480_v0  ;;  %210 = vst [vmem:[%s470_s23 + $0x378] sm:$0xff] %v480_v0 }
  0x4e   : > { %211 = vst [vmem:[%s470_s23 + $0x380] sm:$0xff] %v480_v0  ;;  %212 = vst [vmem:[%s470_s23 + $0x388] sm:$0xff] %v480_v0 }
  0x4f   : > { %213 = vst [vmem:[%s470_s23 + $0x390] sm:$0xff] %v480_v0  ;;  %214 = vst [vmem:[%s470_s23 + $0x398] sm:$0xff] %v480_v0 }
  0x50   : > { %215 = vst [vmem:[%s470_s23 + $0x3a0] sm:$0xff] %v480_v0  ;;  %216 = vst [vmem:[%s470_s23 + $0x3a8] sm:$0xff] %v480_v0 }
  0x51   : > { %217 = vst [vmem:[%s470_s23 + $0x3b0] sm:$0xff] %v480_v0  ;;  %218 = vst [vmem:[%s470_s23 + $0x3b8] sm:$0xff] %v480_v0 }
  0x52   : > { %219 = vst [vmem:[%s470_s23 + $0x3c0] sm:$0xff] %v480_v0  ;;  %220 = vst [vmem:[%s470_s23 + $0x3c8] sm:$0xff] %v480_v0 }
  0x53   : > { %221 = vst [vmem:[%s470_s23 + $0x3d0] sm:$0xff] %v480_v0  ;;  %222 = vst [vmem:[%s470_s23 + $0x3d8] sm:$0xff] %v480_v0 }
  0x54   : > { %223 = vst [vmem:[%s470_s23 + $0x3e0] sm:$0xff] %v480_v0  ;;  %224 = vst [vmem:[%s470_s23 + $0x3e8] sm:$0xff] %v480_v0 }
  0x55   : > { %225 = vst [vmem:[%s470_s23 + $0x3f0] sm:$0xff] %v480_v0  ;;  %226 = vst [vmem:[%s470_s23 + $0x3f8] sm:$0xff] %v480_v0 }
  0x56   : > { %355 = shalt.err (!%p352_p2)
}
  0x57   : > { %s356_s4 = scalar_lea.hbm %s476_s27, 16384  ;;  %s360_s7 = scalar_lea.hbm %s782_s1, 65536 }
  0x58   : > { %p357_p3 = scmp.ne.s32.totalorder %s476_s27, %s356_s4  ;;  %p361_p8 = scmp.lt.u32.totalorder %s476_s27, %s782_s1 }
  0x59   : > { %p362_p9 = scmp.lt.u32.totalorder %s360_s7, %s356_s4  ;;  %p364_p11 = scmp.lt.u32.totalorder %s356_s4, %s476_s27 }
  0x5a   : > { %p358_p4 = pnand %p357_p3, %p457_p5 }
  0x5b   : > { %p363_p10 = por %p362_p9, %p361_p8 }
  0x5c   : > { %p359_p7 = pneg %p358_p4 }
  0x5d   : > { %p365_p12 = por %p364_p11, %p363_p10 }
  0x5f   : > { %p366_p13 = pnand %p365_p12, %p359_p7 }
  0x61   : > { %369 = shalt.err (!%p366_p13)
}
  0x62   : > { %s407_s14 = smov 128   ;;  %s408_s15 = smov 8  }
  0x63   : > { %301 = dma.vmem_to_hbm [thread:$0]  (%p457_p5), %s478_s24, 16384, %s476_s27, %s740_s28, %s407_s14, %s407_s14, %s408_s15  }
  0x64 PF: > { %p307_p0 = scmp.ge.s32.totalorder %s404_s11, 2  ;;  %s256_s19 = sand.u32 1, %s392_s8  }
  0x65   : > { %s257_s20 = scalar_lea.sflag [#allocation4], %s256_s19 }
  0x66   : > { %p304_p1 = pnand %p307_p0, %p461_p6 }
  0x68   : > { %387 = dma.done.wait (!%p304_p1), %s257_s20, 16384  }
  0x69   : > { %389 = vsyncadd (!%p304_p1), %s257_s20, 4294950912  ;;  %p12_p2 = scmp.ge.s32.totalorder %s445_s13, 6   ;;  %s785_s8 = smov %s396_s9 }
  0x6a   : > { %s786_s9 = smov %s400_s10  ;;  %s787_s10 = smov %s455_s16 }
  0x6b   : > { %s788_s11 = smov %s445_s13  ;;  %14 = sbr.rel (!%p12_p2) target bundleno = 5 (0x5), region = 56 }
  0x72   :  { %262 = vsyncpa [#allocation4], 1 }
  0x73   :  { %264 = vsyncpa [#allocation4 + $0x1], 1 }

</bundles_post_ra>
